<compile_context>
chip_gen: v7x
topology: tpu7x:2x2x1
jax: 0.10.0
libtpu: 0.0.40
codegen_flags: <defaults>
</compile_context>

<pallas_src>
import numpy as np
import jax
import jax.numpy as jnp
from jax.experimental import pallas as pl
from jax.experimental.pallas import tpu as pltpu

LEAKY_SLOPE = 0.2
BN_EPS = 1e-5
# channel widths of the MotionDis conv stack: 3 -> 16 -> 32 -> 64 -> 64 -> 1
CH = (3, 16, 32, 64, 64, 1)


def _conv_lengths(T):
    """Temporal lengths after each conv (k=4,s=2,p=1 x4, then k=3,s=2,p=0)."""
    L1 = (T + 2 - 4) // 2 + 1
    L2 = (L1 + 2 - 4) // 2 + 1
    L3 = (L2 + 2 - 4) // 2 + 1
    L4 = (L3 + 2 - 4) // 2 + 1
    L5 = (L4 - 3) // 2 + 1
    return L1, L2, L3, L4, L5


# ----------------------------------------------------------------------------
# Kernel: whole MotionDis forward for the whole batch in one invocation
# ----------------------------------------------------------------------------
def make_motion_dis_kernel(B, T, layout):
    L1, L2, L3, L4, L5 = _conv_lengths(T)
    assert L5 == 1, "MotionDis needs a temporal length that reduces to 1 (e.g. T=64)"
    F1, F2, F3 = L1 + 1, L2 + 1, L3 + 1          # rows per batch in u1/u2/u3
    C1, C2, C3 = CH[1], CH[2], CH[3]

    def kernel(x0_ref, p_ref, o_ref, u1, u2, u3):
        def w(name):                              # static slice of the packed params
            off, r, c = layout[name]
            return p_ref[off:off + r, 0:c]

        def lrelu(v):                             # LeakyReLU(0.2)
            return jnp.maximum(v, LEAKY_SLOPE * v)

        def conv_pair(src, base, lout, wa, wb, bias):
            # k=4, s=2, p=1 conv on the time-pair folded buffer `src`
            # (row q = [y[q-1] | y[q]]):  out[t] = src[base+2t] @ Wa
            #                                    + src[base+2t+2] @ Wb + bias
            return (jnp.dot(src[pl.ds(base, lout, 2), :], wa,
                            preferred_element_type=jnp.float32)
                    + jnp.dot(src[pl.ds(base + 2, lout, 2), :], wb,
                              preferred_element_type=jnp.float32)
                    + bias)

        def fold_store(dst, base, lin, cin, y):
            # write y at two lane offsets: dst[q, 0:cin] = y[q-1], dst[q, cin:2cin] = y[q]
            # and zero only the two pad slots (row base lanes[0:cin], row base+lin lanes[cin:2cin]).
            dst[base + 1:base + 1 + lin, 0:cin] = y
            dst[base:base + lin, cin:2 * cin] = y
            dst[base:base + 1, 0:cin] = jnp.zeros((1, cin), jnp.float32)
            dst[base + lin:base + lin + 1, cin:2 * cin] = jnp.zeros((1, cin), jnp.float32)

        # ---- h0: one batch-merged matmul over the XLA-side im2col input --------
        y0 = lrelu(jnp.dot(x0_ref[...], w("w0"),
                           preferred_element_type=jnp.float32) + w("b0"))   # (B*L1, 16)
        for b in range(B):
            fold_store(u1, b * F1, L1, C1, y0[b * L1:(b + 1) * L1, :])

        # ---- h1 (+ bn1 folded): 2 matmuls/batch, contraction 2*C1 = 32 ---------
        wa, wb, bias = w("wa1"), w("wb1"), w("b1")
        for b in range(B):
            y1 = lrelu(conv_pair(u1, b * F1, L2, wa, wb, bias))              # (L2, 32)
            fold_store(u2, b * F2, L2, C2, y1)

        # ---- h2 (+ bn2 folded): contraction 2*C2 = 64 ---------------------------
        wa, wb, bias = w("wa2"), w("wb2"), w("b2")
        for b in range(B):
            y2 = lrelu(conv_pair(u2, b * F2, L3, wa, wb, bias))              # (L3, 64)
            fold_store(u3, b * F3, L3, C3, y2)

        # ---- h3 (+ bn3 folded, contraction 2*C3 = 128), then h4 + sigmoid -------
        wa, wb, bias = w("wa3"), w("wb3"), w("b3")
        w4, b4 = w("w4"), w("b4")
        for b in range(B):
            y3 = lrelu(conv_pair(u3, b * F3, L4, wa, wb, bias))              # (L4, 64)
            # h4: Conv1d(64->1, k=3, s=2, no pad) -> single output position.
            # 192 MACs: do it on the VPU + cross-lane reduce, not the MXU.
            z = jnp.sum(y3[0:3, :] * w4, axis=1, keepdims=True)              # (3, 1)
            z = jnp.sum(z, axis=0, keepdims=True) + b4                       # (1, 1)
            o_ref[b:b + 1, :] = 1.0 / (1.0 + jnp.exp(-z))                    # sigmoid

    return kernel, (F1, F2, F3)


# ----------------------------------------------------------------------------
# Wrapper
# ----------------------------------------------------------------------------
def motion_dis_forward(x, packed, layout):
    """x: (B, 3, T) float32.  packed/layout: output of pack_params()."""
    B, C, T = x.shape
    assert C == CH[0]
    L1 = (T + 2 - 4) // 2 + 1
    kernel, (F1, F2, F3) = make_motion_dis_kernel(B, T, layout)

    # XLA-side layer-0 im2col (free): row (b,t) = [x_pad[b, 2t+j, c] for j=0..3, c=0..2]
    xt = jnp.pad(jnp.transpose(x, (0, 2, 1)), ((0, 0), (1, 1), (0, 0)))      # (B, T+2, 3)
    x0 = jnp.concatenate([xt[:, j:j + 2 * L1:2, :] for j in range(4)], axis=-1)
    x0 = x0.reshape(B * L1, 4 * CH[0])                                       # (B*L1, 12)

    return pl.pallas_call(
        kernel,
        out_shape=jax.ShapeDtypeStruct((B, 1), jnp.float32),
        scratch_shapes=[
            pltpu.VMEM((B * F1, 2 * CH[1]), jnp.float32),   # h0 output, time-pair folded
            pltpu.VMEM((B * F2, 2 * CH[2]), jnp.float32),   # h1 output
            pltpu.VMEM((B * F3, 2 * CH[3]), jnp.float32),   # h2 output
        ],
    )(x0, packed)


# ----------------------------------------------------------------------------
# Parameters (PyTorch layout) + fold / repack into the single kernel buffer
# ----------------------------------------------------------------------------
def init_params(key):
    ks = jax.random.split(key, 8)

    def conv_init(k, cout, cin, ksz):
        lim = 1.0 / np.sqrt(cin * ksz)
        kw, kb = jax.random.split(k)
        w = jax.random.uniform(kw, (cout, cin, ksz), jnp.float32, -lim, lim)
        b = jax.random.uniform(kb, (cout,), jnp.float32, -lim, lim)
        return w, b

    def bn_init(k, c):
        k1, k2, k3, k4 = jax.random.split(k, 4)
        return {"gamma": 1.0 + 0.2 * jax.random.normal(k1, (c,), jnp.float32),
                "beta": 0.2 * jax.random.normal(k2, (c,), jnp.float32),
                "mean": 0.2 * jax.random.normal(k3, (c,), jnp.float32),
                "var": jax.random.uniform(k4, (c,), jnp.float32, 0.5, 1.5)}

    p = {}
    p["h0.w"], p["h0.b"] = conv_init(ks[0], CH[1], CH[0], 4)
    p["h1.w"], p["h1.b"] = conv_init(ks[1], CH[2], CH[1], 4)
    p["h2.w"], p["h2.b"] = conv_init(ks[2], CH[3], CH[2], 4)
    p["h3.w"], p["h3.b"] = conv_init(ks[3], CH[4], CH[3], 4)
    p["h4.w"], p["h4.b"] = conv_init(ks[4], CH[5], CH[4], 3)
    p["bn1"] = bn_init(ks[5], CH[2])
    p["bn2"] = bn_init(ks[6], CH[3])
    p["bn3"] = bn_init(ks[7], CH[4])
    return p


def _round_up(n, m):
    return (n + m - 1) // m * m


def pack_params(p):
    """Fold eval-mode BN into conv weights, build tap-pair matrices for the
    time-pair-folded layout, and pack everything into ONE (R,128) f32 buffer."""
    def fold_bn(w, b, q):
        s = q["gamma"] * jax.lax.rsqrt(q["var"] + BN_EPS)
        return w * s[:, None, None], (b - q["mean"]) * s + q["beta"]

    w1, b1 = fold_bn(p["h1.w"], p["h1.b"], p["bn1"])
    w2, b2 = fold_bn(p["h2.w"], p["h2.b"], p["bn2"])
    w3, b3 = fold_bn(p["h3.w"], p["h3.b"], p["bn3"])

    def tap_pair(w):                                   # (Cout,Cin,4) -> Wa(taps 0,1), Wb(taps 2,3)
        wt = jnp.transpose(w, (2, 1, 0))               # (4, Cin, Cout)
        return (jnp.concatenate([wt[0], wt[1]], axis=0),
                jnp.concatenate([wt[2], wt[3]], axis=0))

    w0_flat = jnp.transpose(p["h0.w"], (2, 1, 0)).reshape(4 * CH[0], CH[1])  # (12, 16)
    wa1, wb1 = tap_pair(w1)
    wa2, wb2 = tap_pair(w2)
    wa3, wb3 = tap_pair(w3)
    w4p = jnp.transpose(p["h4.w"][0], (1, 0))                                # (3, 64)

    pieces = [("w0", w0_flat), ("b0", p["h0.b"][None, :]),
              ("wa1", wa1), ("wb1", wb1), ("b1", b1[None, :]),
              ("wa2", wa2), ("wb2", wb2), ("b2", b2[None, :]),
              ("wa3", wa3), ("wb3", wb3), ("b3", b3[None, :]),
              ("w4", w4p), ("b4", p["h4.b"].reshape(1, 1))]

    layout, blocks, off = {}, [], 0
    for name, arr in pieces:
        r, c = arr.shape
        layout[name] = (off, r, c)                      # static (row offset, rows, cols)
        blk = jnp.zeros((_round_up(r, 8), 128), jnp.float32).at[:r, :c].set(arr)
        blocks.append(blk)
        off += blk.shape[0]
    return jnp.concatenate(blocks, axis=0), layout      # (512, 128) f32, ~256 KiB, one DMA


# ----------------------------------------------------------------------------
# Pure-JAX reference (explicit convs + BatchNorm, eval mode) for correctness
# ----------------------------------------------------------------------------
def reference_forward(x, p):
    prec = jax.lax.Precision.HIGHEST

    def conv(v, w, b, stride, pad):
        y = jax.lax.conv_general_dilated(
            v, w, window_strides=(stride,), padding=[(pad, pad)],
            dimension_numbers=("NCH", "OIH", "NCH"), precision=prec)
        return y + b[None, :, None]

    def bn(v, q):
        s = q["gamma"] * jax.lax.rsqrt(q["var"] + BN_EPS)
        return (v - q["mean"][None, :, None]) * s[None, :, None] + q["beta"][None, :, None]

    def lrelu(v):
        return jnp.where(v >= 0, v, LEAKY_SLOPE * v)

    # nn.Dropout is the identity in eval mode.
    y = lrelu(conv(x, p["h0.w"], p["h0.b"], 2, 1))
    y = lrelu(bn(conv(y, p["h1.w"], p["h1.b"], 2, 1), p["bn1"]))
    y = lrelu(bn(conv(y, p["h2.w"], p["h2.b"], 2, 1), p["bn2"]))
    y = lrelu(bn(conv(y, p["h3.w"], p["h3.b"], 2, 1), p["bn3"]))
    y = jax.nn.sigmoid(conv(y, p["h4.w"], p["h4.b"], 2, 0))
    return y.reshape(x.shape[0], 1)


# ----------------------------------------------------------------------------
if __name__ == "__main__":
    B, T = 2, 64                      # MotionDis input: (batch, 3, time); T=64 -> output length 1
    key = jax.random.PRNGKey(0)
    kx, kp = jax.random.split(key)
    x = jax.random.normal(kx, (B, 3, T), jnp.float32)
    params = init_params(kp)

    packed, layout = pack_params(params)
    fwd = jax.jit(lambda xx, pp: motion_dis_forward(xx, pp, layout))
    out = fwd(x, packed)
    jax.block_until_ready(out)

    ref = reference_forward(x, params)
    np.testing.assert_allclose(np.asarray(out), np.asarray(ref), rtol=1e-3, atol=1e-4)

    print("KERNEL_OK")
</pallas_src>

<mosaic_0001>
module attributes {stable_mosaic.version = 11 : i64} {
  func.func @kernel(%arg0: memref<64x12xf32, #tpu.memory_space<vmem>>, %arg1: memref<512x128xf32, #tpu.memory_space<vmem>>, %arg2: memref<2x1xf32, #tpu.memory_space<vmem>>, %arg3: memref<66x32xf32, #tpu.memory_space<vmem>>, %arg4: memref<34x64xf32, #tpu.memory_space<vmem>>, %arg5: memref<18x128xf32, #tpu.memory_space<vmem>>) attributes {dimension_semantics = [], scalar_prefetch = 0 : i64, scratch_operands = 3 : i64, tpu.core_type = #tpu.core_type<tc>} {
    %c0 = arith.constant 0 : index
    %c0_0 = arith.constant 0 : index
    %0 = vector.load %arg0[%c0, %c0_0] : memref<64x12xf32, #tpu.memory_space<vmem>>, vector<64x12xf32>
    %c0_1 = arith.constant 0 : index
    %c0_2 = arith.constant 0 : index
    %1 = vector.load %arg1[%c0_1, %c0_2] : memref<512x128xf32, #tpu.memory_space<vmem>>, vector<12x16xf32>
    %cst = arith.constant dense<0.000000e+00> : vector<64x16xf32>
    %2 = tpu.matmul %0, %1, %cst {dimension_numbers = #tpu.dot_dimension_numbers<[1], [0], [0], [1], [0, 0, 1, 1], [], []>} : vector<64x12xf32>, vector<12x16xf32>, vector<64x16xf32> -> vector<64x16xf32>
    %c16 = arith.constant 16 : index
    %c0_3 = arith.constant 0 : index
    %3 = vector.load %arg1[%c16, %c0_3] : memref<512x128xf32, #tpu.memory_space<vmem>>, vector<1x16xf32>
    %4 = vector.broadcast %3 : vector<1x16xf32> to vector<64x16xf32>
    %5 = arith.addf %2, %4 : vector<64x16xf32>
    %cst_4 = arith.constant 2.000000e-01 : f32
    %6 = vector.broadcast %cst_4 : f32 to vector<64x16xf32>
    %7 = arith.mulf %6, %5 : vector<64x16xf32>
    %8 = arith.maximumf %5, %7 : vector<64x16xf32>
    %9 = vector.extract_strided_slice %8 {offsets = [0, 0], sizes = [32, 16], strides = [1, 1]} : vector<64x16xf32> to vector<32x16xf32>
    %c1 = arith.constant 1 : index
    %c0_5 = arith.constant 0 : index
    %10 = vector.load %arg3[%c1, %c0_5] : memref<66x32xf32, #tpu.memory_space<vmem>>, vector<32x16xf32>
    tpu.vector_store %arg3[%c1, %c0_5], %9 {strides = array<i32>} : memref<66x32xf32, #tpu.memory_space<vmem>>, vector<32x16xf32>,
    %c0_6 = arith.constant 0 : index
    %c16_7 = arith.constant 16 : index
    %11 = vector.load %arg3[%c0_6, %c16_7] : memref<66x32xf32, #tpu.memory_space<vmem>>, vector<32x16xf32>
    tpu.vector_store %arg3[%c0_6, %c16_7], %9 {strides = array<i32>} : memref<66x32xf32, #tpu.memory_space<vmem>>, vector<32x16xf32>,
    %cst_8 = arith.constant 0.000000e+00 : f32
    %12 = vector.broadcast %cst_8 : f32 to vector<1x16xf32>
    %c0_9 = arith.constant 0 : index
    %c0_10 = arith.constant 0 : index
    %13 = vector.load %arg3[%c0_9, %c0_10] : memref<66x32xf32, #tpu.memory_space<vmem>>, vector<1x16xf32>
    tpu.vector_store %arg3[%c0_9, %c0_10], %12 {strides = array<i32>} : memref<66x32xf32, #tpu.memory_space<vmem>>, vector<1x16xf32>,
    %cst_11 = arith.constant 0.000000e+00 : f32
    %14 = vector.broadcast %cst_11 : f32 to vector<1x16xf32>
    %c32 = arith.constant 32 : index
    %c16_12 = arith.constant 16 : index
    %15 = vector.load %arg3[%c32, %c16_12] : memref<66x32xf32, #tpu.memory_space<vmem>>, vector<1x16xf32>
    tpu.vector_store %arg3[%c32, %c16_12], %14 {strides = array<i32>} : memref<66x32xf32, #tpu.memory_space<vmem>>, vector<1x16xf32>,
    %16 = vector.extract_strided_slice %8 {offsets = [32, 0], sizes = [32, 16], strides = [1, 1]} : vector<64x16xf32> to vector<32x16xf32>
    %c34 = arith.constant 34 : index
    %c0_13 = arith.constant 0 : index
    %17 = vector.load %arg3[%c34, %c0_13] : memref<66x32xf32, #tpu.memory_space<vmem>>, vector<32x16xf32>
    tpu.vector_store %arg3[%c34, %c0_13], %16 {strides = array<i32>} : memref<66x32xf32, #tpu.memory_space<vmem>>, vector<32x16xf32>,
    %c33 = arith.constant 33 : index
    %c16_14 = arith.constant 16 : index
    %18 = vector.load %arg3[%c33, %c16_14] : memref<66x32xf32, #tpu.memory_space<vmem>>, vector<32x16xf32>
    tpu.vector_store %arg3[%c33, %c16_14], %16 {strides = array<i32>} : memref<66x32xf32, #tpu.memory_space<vmem>>, vector<32x16xf32>,
    %cst_15 = arith.constant 0.000000e+00 : f32
    %19 = vector.broadcast %cst_15 : f32 to vector<1x16xf32>
    %c33_16 = arith.constant 33 : index
    %c0_17 = arith.constant 0 : index
    %20 = vector.load %arg3[%c33_16, %c0_17] : memref<66x32xf32, #tpu.memory_space<vmem>>, vector<1x16xf32>
    tpu.vector_store %arg3[%c33_16, %c0_17], %19 {strides = array<i32>} : memref<66x32xf32, #tpu.memory_space<vmem>>, vector<1x16xf32>,
    %cst_18 = arith.constant 0.000000e+00 : f32
    %21 = vector.broadcast %cst_18 : f32 to vector<1x16xf32>
    %c65 = arith.constant 65 : index
    %c16_19 = arith.constant 16 : index
    %22 = vector.load %arg3[%c65, %c16_19] : memref<66x32xf32, #tpu.memory_space<vmem>>, vector<1x16xf32>
    tpu.vector_store %arg3[%c65, %c16_19], %21 {strides = array<i32>} : memref<66x32xf32, #tpu.memory_space<vmem>>, vector<1x16xf32>,
    %c24 = arith.constant 24 : index
    %c0_20 = arith.constant 0 : index
    %23 = vector.load %arg1[%c24, %c0_20] : memref<512x128xf32, #tpu.memory_space<vmem>>, vector<32x32xf32>
    %c56 = arith.constant 56 : index
    %c0_21 = arith.constant 0 : index
    %24 = vector.load %arg1[%c56, %c0_21] : memref<512x128xf32, #tpu.memory_space<vmem>>, vector<32x32xf32>
    %c88 = arith.constant 88 : index
    %c0_22 = arith.constant 0 : index
    %25 = vector.load %arg1[%c88, %c0_22] : memref<512x128xf32, #tpu.memory_space<vmem>>, vector<1x32xf32>
    %c0_23 = arith.constant 0 : index
    %c0_24 = arith.constant 0 : index
    %26 = tpu.strided_load %arg3[%c0_23, %c0_24] {strides = array<i32: 2, 1>} : memref<66x32xf32, #tpu.memory_space<vmem>>, vector<16x32xf32>
    %cst_25 = arith.constant dense<0.000000e+00> : vector<16x32xf32>
    %27 = tpu.matmul %26, %23, %cst_25 {dimension_numbers = #tpu.dot_dimension_numbers<[1], [0], [0], [1], [0, 0, 1, 1], [], []>} : vector<16x32xf32>, vector<32x32xf32>, vector<16x32xf32> -> vector<16x32xf32>
    %c2 = arith.constant 2 : index
    %c0_26 = arith.constant 0 : index
    %28 = tpu.strided_load %arg3[%c2, %c0_26] {strides = array<i32: 2, 1>} : memref<66x32xf32, #tpu.memory_space<vmem>>, vector<16x32xf32>
    %cst_27 = arith.constant dense<0.000000e+00> : vector<16x32xf32>
    %29 = tpu.matmul %28, %24, %cst_27 {dimension_numbers = #tpu.dot_dimension_numbers<[1], [0], [0], [1], [0, 0, 1, 1], [], []>} : vector<16x32xf32>, vector<32x32xf32>, vector<16x32xf32> -> vector<16x32xf32>
    %30 = arith.addf %27, %29 : vector<16x32xf32>
    %31 = vector.broadcast %25 : vector<1x32xf32> to vector<16x32xf32>
    %32 = arith.addf %30, %31 : vector<16x32xf32>
    %cst_28 = arith.constant 2.000000e-01 : f32
    %33 = vector.broadcast %cst_28 : f32 to vector<16x32xf32>
    %34 = arith.mulf %33, %32 : vector<16x32xf32>
    %35 = arith.maximumf %32, %34 : vector<16x32xf32>
    %c1_29 = arith.constant 1 : index
    %c0_30 = arith.constant 0 : index
    %36 = vector.load %arg4[%c1_29, %c0_30] : memref<34x64xf32, #tpu.memory_space<vmem>>, vector<16x32xf32>
    tpu.vector_store %arg4[%c1_29, %c0_30], %35 {strides = array<i32>} : memref<34x64xf32, #tpu.memory_space<vmem>>, vector<16x32xf32>,
    %c0_31 = arith.constant 0 : index
    %c32_32 = arith.constant 32 : index
    %37 = vector.load %arg4[%c0_31, %c32_32] : memref<34x64xf32, #tpu.memory_space<vmem>>, vector<16x32xf32>
    tpu.vector_store %arg4[%c0_31, %c32_32], %35 {strides = array<i32>} : memref<34x64xf32, #tpu.memory_space<vmem>>, vector<16x32xf32>,
    %cst_33 = arith.constant 0.000000e+00 : f32
    %38 = vector.broadcast %cst_33 : f32 to vector<1x32xf32>
    %c0_34 = arith.constant 0 : index
    %c0_35 = arith.constant 0 : index
    %39 = vector.load %arg4[%c0_34, %c0_35] : memref<34x64xf32, #tpu.memory_space<vmem>>, vector<1x32xf32>
    tpu.vector_store %arg4[%c0_34, %c0_35], %38 {strides = array<i32>} : memref<34x64xf32, #tpu.memory_space<vmem>>, vector<1x32xf32>,
    %cst_36 = arith.constant 0.000000e+00 : f32
    %40 = vector.broadcast %cst_36 : f32 to vector<1x32xf32>
    %c16_37 = arith.constant 16 : index
    %c32_38 = arith.constant 32 : index
    %41 = vector.load %arg4[%c16_37, %c32_38] : memref<34x64xf32, #tpu.memory_space<vmem>>, vector<1x32xf32>
    tpu.vector_store %arg4[%c16_37, %c32_38], %40 {strides = array<i32>} : memref<34x64xf32, #tpu.memory_space<vmem>>, vector<1x32xf32>,
    %c33_39 = arith.constant 33 : index
    %c0_40 = arith.constant 0 : index
    %42 = tpu.strided_load %arg3[%c33_39, %c0_40] {strides = array<i32: 2, 1>} : memref<66x32xf32, #tpu.memory_space<vmem>>, vector<16x32xf32>
    %cst_41 = arith.constant dense<0.000000e+00> : vector<16x32xf32>
    %43 = tpu.matmul %42, %23, %cst_41 {dimension_numbers = #tpu.dot_dimension_numbers<[1], [0], [0], [1], [0, 0, 1, 1], [], []>} : vector<16x32xf32>, vector<32x32xf32>, vector<16x32xf32> -> vector<16x32xf32>
    %c35 = arith.constant 35 : index
    %c0_42 = arith.constant 0 : index
    %44 = tpu.strided_load %arg3[%c35, %c0_42] {strides = array<i32: 2, 1>} : memref<66x32xf32, #tpu.memory_space<vmem>>, vector<16x32xf32>
    %cst_43 = arith.constant dense<0.000000e+00> : vector<16x32xf32>
    %45 = tpu.matmul %44, %24, %cst_43 {dimension_numbers = #tpu.dot_dimension_numbers<[1], [0], [0], [1], [0, 0, 1, 1], [], []>} : vector<16x32xf32>, vector<32x32xf32>, vector<16x32xf32> -> vector<16x32xf32>
    %46 = arith.addf %43, %45 : vector<16x32xf32>
    %47 = vector.broadcast %25 : vector<1x32xf32> to vector<16x32xf32>
    %48 = arith.addf %46, %47 : vector<16x32xf32>
    %cst_44 = arith.constant 2.000000e-01 : f32
    %49 = vector.broadcast %cst_44 : f32 to vector<16x32xf32>
    %50 = arith.mulf %49, %48 : vector<16x32xf32>
    %51 = arith.maximumf %48, %50 : vector<16x32xf32>
    %c18 = arith.constant 18 : index
    %c0_45 = arith.constant 0 : index
    %52 = vector.load %arg4[%c18, %c0_45] : memref<34x64xf32, #tpu.memory_space<vmem>>, vector<16x32xf32>
    tpu.vector_store %arg4[%c18, %c0_45], %51 {strides = array<i32>} : memref<34x64xf32, #tpu.memory_space<vmem>>, vector<16x32xf32>,
    %c17 = arith.constant 17 : index
    %c32_46 = arith.constant 32 : index
    %53 = vector.load %arg4[%c17, %c32_46] : memref<34x64xf32, #tpu.memory_space<vmem>>, vector<16x32xf32>
    tpu.vector_store %arg4[%c17, %c32_46], %51 {strides = array<i32>} : memref<34x64xf32, #tpu.memory_space<vmem>>, vector<16x32xf32>,
    %cst_47 = arith.constant 0.000000e+00 : f32
    %54 = vector.broadcast %cst_47 : f32 to vector<1x32xf32>
    %c17_48 = arith.constant 17 : index
    %c0_49 = arith.constant 0 : index
    %55 = vector.load %arg4[%c17_48, %c0_49] : memref<34x64xf32, #tpu.memory_space<vmem>>, vector<1x32xf32>
    tpu.vector_store %arg4[%c17_48, %c0_49], %54 {strides = array<i32>} : memref<34x64xf32, #tpu.memory_space<vmem>>, vector<1x32xf32>,
    %cst_50 = arith.constant 0.000000e+00 : f32
    %56 = vector.broadcast %cst_50 : f32 to vector<1x32xf32>
    %c33_51 = arith.constant 33 : index
    %c32_52 = arith.constant 32 : index
    %57 = vector.load %arg4[%c33_51, %c32_52] : memref<34x64xf32, #tpu.memory_space<vmem>>, vector<1x32xf32>
    tpu.vector_store %arg4[%c33_51, %c32_52], %56 {strides = array<i32>} : memref<34x64xf32, #tpu.memory_space<vmem>>, vector<1x32xf32>,
    %c96 = arith.constant 96 : index
    %c0_53 = arith.constant 0 : index
    %58 = vector.load %arg1[%c96, %c0_53] : memref<512x128xf32, #tpu.memory_space<vmem>>, vector<64x64xf32>
    %c160 = arith.constant 160 : index
    %c0_54 = arith.constant 0 : index
    %59 = vector.load %arg1[%c160, %c0_54] : memref<512x128xf32, #tpu.memory_space<vmem>>, vector<64x64xf32>
    %c224 = arith.constant 224 : index
    %c0_55 = arith.constant 0 : index
    %60 = vector.load %arg1[%c224, %c0_55] : memref<512x128xf32, #tpu.memory_space<vmem>>, vector<1x64xf32>
    %c0_56 = arith.constant 0 : index
    %c0_57 = arith.constant 0 : index
    %61 = tpu.strided_load %arg4[%c0_56, %c0_57] {strides = array<i32: 2, 1>} : memref<34x64xf32, #tpu.memory_space<vmem>>, vector<8x64xf32>
    %cst_58 = arith.constant dense<0.000000e+00> : vector<8x64xf32>
    %62 = tpu.matmul %61, %58, %cst_58 {dimension_numbers = #tpu.dot_dimension_numbers<[1], [0], [0], [1], [0, 0, 1, 1], [], []>} : vector<8x64xf32>, vector<64x64xf32>, vector<8x64xf32> -> vector<8x64xf32>
    %c2_59 = arith.constant 2 : index
    %c0_60 = arith.constant 0 : index
    %63 = tpu.strided_load %arg4[%c2_59, %c0_60] {strides = array<i32: 2, 1>} : memref<34x64xf32, #tpu.memory_space<vmem>>, vector<8x64xf32>
    %cst_61 = arith.constant dense<0.000000e+00> : vector<8x64xf32>
    %64 = tpu.matmul %63, %59, %cst_61 {dimension_numbers = #tpu.dot_dimension_numbers<[1], [0], [0], [1], [0, 0, 1, 1], [], []>} : vector<8x64xf32>, vector<64x64xf32>, vector<8x64xf32> -> vector<8x64xf32>
    %65 = arith.addf %62, %64 : vector<8x64xf32>
    %66 = vector.broadcast %60 : vector<1x64xf32> to vector<8x64xf32>
    %67 = arith.addf %65, %66 : vector<8x64xf32>
    %cst_62 = arith.constant 2.000000e-01 : f32
    %68 = vector.broadcast %cst_62 : f32 to vector<8x64xf32>
    %69 = arith.mulf %68, %67 : vector<8x64xf32>
    %70 = arith.maximumf %67, %69 : vector<8x64xf32>
    %c1_63 = arith.constant 1 : index
    %c0_64 = arith.constant 0 : index
    %71 = vector.load %arg5[%c1_63, %c0_64] : memref<18x128xf32, #tpu.memory_space<vmem>>, vector<8x64xf32>
    tpu.vector_store %arg5[%c1_63, %c0_64], %70 {strides = array<i32>} : memref<18x128xf32, #tpu.memory_space<vmem>>, vector<8x64xf32>,
    %c0_65 = arith.constant 0 : index
    %c64 = arith.constant 64 : index
    %72 = vector.load %arg5[%c0_65, %c64] : memref<18x128xf32, #tpu.memory_space<vmem>>, vector<8x64xf32>
    tpu.vector_store %arg5[%c0_65, %c64], %70 {strides = array<i32>} : memref<18x128xf32, #tpu.memory_space<vmem>>, vector<8x64xf32>,
    %cst_66 = arith.constant 0.000000e+00 : f32
    %73 = vector.broadcast %cst_66 : f32 to vector<1x64xf32>
    %c0_67 = arith.constant 0 : index
    %c0_68 = arith.constant 0 : index
    %74 = vector.load %arg5[%c0_67, %c0_68] : memref<18x128xf32, #tpu.memory_space<vmem>>, vector<1x64xf32>
    tpu.vector_store %arg5[%c0_67, %c0_68], %73 {strides = array<i32>} : memref<18x128xf32, #tpu.memory_space<vmem>>, vector<1x64xf32>,
    %cst_69 = arith.constant 0.000000e+00 : f32
    %75 = vector.broadcast %cst_69 : f32 to vector<1x64xf32>
    %c8 = arith.constant 8 : index
    %c64_70 = arith.constant 64 : index
    %76 = vector.load %arg5[%c8, %c64_70] : memref<18x128xf32, #tpu.memory_space<vmem>>, vector<1x64xf32>
    tpu.vector_store %arg5[%c8, %c64_70], %75 {strides = array<i32>} : memref<18x128xf32, #tpu.memory_space<vmem>>, vector<1x64xf32>,
    %c17_71 = arith.constant 17 : index
    %c0_72 = arith.constant 0 : index
    %77 = tpu.strided_load %arg4[%c17_71, %c0_72] {strides = array<i32: 2, 1>} : memref<34x64xf32, #tpu.memory_space<vmem>>, vector<8x64xf32>
    %cst_73 = arith.constant dense<0.000000e+00> : vector<8x64xf32>
    %78 = tpu.matmul %77, %58, %cst_73 {dimension_numbers = #tpu.dot_dimension_numbers<[1], [0], [0], [1], [0, 0, 1, 1], [], []>} : vector<8x64xf32>, vector<64x64xf32>, vector<8x64xf32> -> vector<8x64xf32>
    %c19 = arith.constant 19 : index
    %c0_74 = arith.constant 0 : index
    %79 = tpu.strided_load %arg4[%c19, %c0_74] {strides = array<i32: 2, 1>} : memref<34x64xf32, #tpu.memory_space<vmem>>, vector<8x64xf32>
    %cst_75 = arith.constant dense<0.000000e+00> : vector<8x64xf32>
    %80 = tpu.matmul %79, %59, %cst_75 {dimension_numbers = #tpu.dot_dimension_numbers<[1], [0], [0], [1], [0, 0, 1, 1], [], []>} : vector<8x64xf32>, vector<64x64xf32>, vector<8x64xf32> -> vector<8x64xf32>
    %81 = arith.addf %78, %80 : vector<8x64xf32>
    %82 = vector.broadcast %60 : vector<1x64xf32> to vector<8x64xf32>
    %83 = arith.addf %81, %82 : vector<8x64xf32>
    %cst_76 = arith.constant 2.000000e-01 : f32
    %84 = vector.broadcast %cst_76 : f32 to vector<8x64xf32>
    %85 = arith.mulf %84, %83 : vector<8x64xf32>
    %86 = arith.maximumf %83, %85 : vector<8x64xf32>
    %c10 = arith.constant 10 : index
    %c0_77 = arith.constant 0 : index
    %87 = vector.load %arg5[%c10, %c0_77] : memref<18x128xf32, #tpu.memory_space<vmem>>, vector<8x64xf32>
    tpu.vector_store %arg5[%c10, %c0_77], %86 {strides = array<i32>} : memref<18x128xf32, #tpu.memory_space<vmem>>, vector<8x64xf32>,
    %c9 = arith.constant 9 : index
    %c64_78 = arith.constant 64 : index
    %88 = vector.load %arg5[%c9, %c64_78] : memref<18x128xf32, #tpu.memory_space<vmem>>, vector<8x64xf32>
    tpu.vector_store %arg5[%c9, %c64_78], %86 {strides = array<i32>} : memref<18x128xf32, #tpu.memory_space<vmem>>, vector<8x64xf32>,
    %cst_79 = arith.constant 0.000000e+00 : f32
    %89 = vector.broadcast %cst_79 : f32 to vector<1x64xf32>
    %c9_80 = arith.constant 9 : index
    %c0_81 = arith.constant 0 : index
    %90 = vector.load %arg5[%c9_80, %c0_81] : memref<18x128xf32, #tpu.memory_space<vmem>>, vector<1x64xf32>
    tpu.vector_store %arg5[%c9_80, %c0_81], %89 {strides = array<i32>} : memref<18x128xf32, #tpu.memory_space<vmem>>, vector<1x64xf32>,
    %cst_82 = arith.constant 0.000000e+00 : f32
    %91 = vector.broadcast %cst_82 : f32 to vector<1x64xf32>
    %c17_83 = arith.constant 17 : index
    %c64_84 = arith.constant 64 : index
    %92 = vector.load %arg5[%c17_83, %c64_84] : memref<18x128xf32, #tpu.memory_space<vmem>>, vector<1x64xf32>
    tpu.vector_store %arg5[%c17_83, %c64_84], %91 {strides = array<i32>} : memref<18x128xf32, #tpu.memory_space<vmem>>, vector<1x64xf32>,
    %c232 = arith.constant 232 : index
    %c0_85 = arith.constant 0 : index
    %93 = vector.load %arg1[%c232, %c0_85] : memref<512x128xf32, #tpu.memory_space<vmem>>, vector<128x64xf32>
    %c360 = arith.constant 360 : index
    %c0_86 = arith.constant 0 : index
    %94 = vector.load %arg1[%c360, %c0_86] : memref<512x128xf32, #tpu.memory_space<vmem>>, vector<128x64xf32>
    %c488 = arith.constant 488 : index
    %c0_87 = arith.constant 0 : index
    %95 = vector.load %arg1[%c488, %c0_87] : memref<512x128xf32, #tpu.memory_space<vmem>>, vector<1x64xf32>
    %c496 = arith.constant 496 : index
    %c0_88 = arith.constant 0 : index
    %96 = vector.load %arg1[%c496, %c0_88] : memref<512x128xf32, #tpu.memory_space<vmem>>, vector<3x64xf32>
    %c504 = arith.constant 504 : index
    %c0_89 = arith.constant 0 : index
    %97 = vector.load %arg1[%c504, %c0_89] : memref<512x128xf32, #tpu.memory_space<vmem>>, vector<1x1xf32>
    %c0_90 = arith.constant 0 : index
    %c0_91 = arith.constant 0 : index
    %98 = tpu.strided_load %arg5[%c0_90, %c0_91] {strides = array<i32: 2, 1>} : memref<18x128xf32, #tpu.memory_space<vmem>>, vector<4x128xf32>
    %cst_92 = arith.constant dense<0.000000e+00> : vector<4x64xf32>
    %99 = tpu.matmul %98, %93, %cst_92 {dimension_numbers = #tpu.dot_dimension_numbers<[1], [0], [0], [1], [0, 0, 1, 1], [], []>} : vector<4x128xf32>, vector<128x64xf32>, vector<4x64xf32> -> vector<4x64xf32>
    %c2_93 = arith.constant 2 : index
    %c0_94 = arith.constant 0 : index
    %100 = tpu.strided_load %arg5[%c2_93, %c0_94] {strides = array<i32: 2, 1>} : memref<18x128xf32, #tpu.memory_space<vmem>>, vector<4x128xf32>
    %cst_95 = arith.constant dense<0.000000e+00> : vector<4x64xf32>
    %101 = tpu.matmul %100, %94, %cst_95 {dimension_numbers = #tpu.dot_dimension_numbers<[1], [0], [0], [1], [0, 0, 1, 1], [], []>} : vector<4x128xf32>, vector<128x64xf32>, vector<4x64xf32> -> vector<4x64xf32>
    %102 = arith.addf %99, %101 : vector<4x64xf32>
    %103 = vector.broadcast %95 : vector<1x64xf32> to vector<4x64xf32>
    %104 = arith.addf %102, %103 : vector<4x64xf32>
    %cst_96 = arith.constant 2.000000e-01 : f32
    %105 = vector.broadcast %cst_96 : f32 to vector<4x64xf32>
    %106 = arith.mulf %105, %104 : vector<4x64xf32>
    %107 = arith.maximumf %104, %106 : vector<4x64xf32>
    %108 = vector.extract_strided_slice %107 {offsets = [0, 0], sizes = [3, 64], strides = [1, 1]} : vector<4x64xf32> to vector<3x64xf32>
    %109 = arith.mulf %108, %96 : vector<3x64xf32>
    %cst_97 = arith.constant dense<0.000000e+00> : vector<3xf32>
    %110 = vector.multi_reduction <add>, %109, %cst_97 [1] : vector<3x64xf32> to vector<3xf32>
    %111 = vector.shape_cast %110 : vector<3xf32> to vector<3x1xf32>
    %cst_98 = arith.constant dense<0.000000e+00> : vector<1xf32>
    %112 = vector.multi_reduction <add>, %111, %cst_98 [0] : vector<3x1xf32> to vector<1xf32>
    %113 = vector.shape_cast %112 : vector<1xf32> to vector<1x1xf32>
    %114 = arith.addf %113, %97 : vector<1x1xf32>
    %cst_99 = arith.constant 0.000000e+00 : f32
    %115 = vector.broadcast %cst_99 : f32 to vector<1x1xf32>
    %116 = arith.subf %115, %114 : vector<1x1xf32>
    %117 = math.exp %116 : vector<1x1xf32>
    %cst_100 = arith.constant 1.000000e+00 : f32
    %118 = vector.broadcast %cst_100 : f32 to vector<1x1xf32>
    %119 = arith.addf %118, %117 : vector<1x1xf32>
    %cst_101 = arith.constant 1.000000e+00 : f32
    %120 = vector.broadcast %cst_101 : f32 to vector<1x1xf32>
    %121 = arith.divf %120, %119 : vector<1x1xf32>
    %c0_102 = arith.constant 0 : index
    %c0_103 = arith.constant 0 : index
    %122 = vector.load %arg2[%c0_102, %c0_103] : memref<2x1xf32, #tpu.memory_space<vmem>>, vector<1x1xf32>
    tpu.vector_store %arg2[%c0_102, %c0_103], %121 {strides = array<i32>} : memref<2x1xf32, #tpu.memory_space<vmem>>, vector<1x1xf32>,
    %c9_104 = arith.constant 9 : index
    %c0_105 = arith.constant 0 : index
    %123 = tpu.strided_load %arg5[%c9_104, %c0_105] {strides = array<i32: 2, 1>} : memref<18x128xf32, #tpu.memory_space<vmem>>, vector<4x128xf32>
    %cst_106 = arith.constant dense<0.000000e+00> : vector<4x64xf32>
    %124 = tpu.matmul %123, %93, %cst_106 {dimension_numbers = #tpu.dot_dimension_numbers<[1], [0], [0], [1], [0, 0, 1, 1], [], []>} : vector<4x128xf32>, vector<128x64xf32>, vector<4x64xf32> -> vector<4x64xf32>
    %c11 = arith.constant 11 : index
    %c0_107 = arith.constant 0 : index
    %125 = tpu.strided_load %arg5[%c11, %c0_107] {strides = array<i32: 2, 1>} : memref<18x128xf32, #tpu.memory_space<vmem>>, vector<4x128xf32>
    %cst_108 = arith.constant dense<0.000000e+00> : vector<4x64xf32>
    %126 = tpu.matmul %125, %94, %cst_108 {dimension_numbers = #tpu.dot_dimension_numbers<[1], [0], [0], [1], [0, 0, 1, 1], [], []>} : vector<4x128xf32>, vector<128x64xf32>, vector<4x64xf32> -> vector<4x64xf32>
    %127 = arith.addf %124, %126 : vector<4x64xf32>
    %128 = vector.broadcast %95 : vector<1x64xf32> to vector<4x64xf32>
    %129 = arith.addf %127, %128 : vector<4x64xf32>
    %cst_109 = arith.constant 2.000000e-01 : f32
    %130 = vector.broadcast %cst_109 : f32 to vector<4x64xf32>
    %131 = arith.mulf %130, %129 : vector<4x64xf32>
    %132 = arith.maximumf %129, %131 : vector<4x64xf32>
    %133 = vector.extract_strided_slice %132 {offsets = [0, 0], sizes = [3, 64], strides = [1, 1]} : vector<4x64xf32> to vector<3x64xf32>
    %134 = arith.mulf %133, %96 : vector<3x64xf32>
    %cst_110 = arith.constant dense<0.000000e+00> : vector<3xf32>
    %135 = vector.multi_reduction <add>, %134, %cst_110 [1] : vector<3x64xf32> to vector<3xf32>
    %136 = vector.shape_cast %135 : vector<3xf32> to vector<3x1xf32>
    %cst_111 = arith.constant dense<0.000000e+00> : vector<1xf32>
    %137 = vector.multi_reduction <add>, %136, %cst_111 [0] : vector<3x1xf32> to vector<1xf32>
    %138 = vector.shape_cast %137 : vector<1xf32> to vector<1x1xf32>
    %139 = arith.addf %138, %97 : vector<1x1xf32>
    %cst_112 = arith.constant 0.000000e+00 : f32
    %140 = vector.broadcast %cst_112 : f32 to vector<1x1xf32>
    %141 = arith.subf %140, %139 : vector<1x1xf32>
    %142 = math.exp %141 : vector<1x1xf32>
    %cst_113 = arith.constant 1.000000e+00 : f32
    %143 = vector.broadcast %cst_113 : f32 to vector<1x1xf32>
    %144 = arith.addf %143, %142 : vector<1x1xf32>
    %cst_114 = arith.constant 1.000000e+00 : f32
    %145 = vector.broadcast %cst_114 : f32 to vector<1x1xf32>
    %146 = arith.divf %145, %144 : vector<1x1xf32>
    %c1_115 = arith.constant 1 : index
    %c0_116 = arith.constant 0 : index
    %147 = vector.load %arg2[%c1_115, %c0_116] : memref<2x1xf32, #tpu.memory_space<vmem>>, vector<1x1xf32>
    tpu.vector_store %arg2[%c1_115, %c0_116], %146 {strides = array<i32>} : memref<2x1xf32, #tpu.memory_space<vmem>>, vector<1x1xf32>,
    return
  }
}

</mosaic_0001>

<bundles_post_ra>
// kernel: _lambda_.1
= control target key start
LH: loop header
LB: loop body
LE: loop exit
PB: predicated region body
PF: predicated region fallthrough
CT: control target
= control target key end

     0   :  { %7 = vsyncpa [#allocation6], 0  ;;  %s2035_s9 = smov [#allocation5]   ;;  %s2324_s0 = inlined_call_operand.vmem [shape: f32[64,12], index: 0, kind: input, shape index: {}]   ;;  %s2325_s1 = inlined_call_operand.hbm [shape: f32[512,128], index: 1, kind: input, shape index: {}]   ;;  %s2326_s2 = inlined_call_operand.vmem [shape: f32[2,1], index: 2, kind: output, shape index: {}]  }
   0x1   :  { %s15_s10 = sshll.u32 %s2035_s9, 4  ;;  %s2011_s13 = scalar_lea.hbm %s2325_s1, 8192  ;;  %s16_s10 = int_to_ptr.vmem [resolvable:$true] %s15_s10 }
   0x2   :  { %p2012_p0 = scmp.ne.s32.totalorder %s2325_s1, %s2011_s13  ;;  %p2015_p1 = scmp.lt.u32.totalorder %s2011_s13, %s2325_s1 }
   0x4   :  { %p2017_p2 = pnand %p2015_p1, %p2012_p0 }
   0x6   :  { %2020 = shalt.err (!%p2017_p2)
}
   0x7   :  { %s2021_s18 = scalar_lea.vmem %s16_s10, 8192  ;;  %p2026_p4 = scmp.lt.s32.totalorder %s16_s10, %s16_s10 }
   0x8   :  { %p2022_p3 = scmp.ne.s32.totalorder %s16_s10, %s2021_s18  ;;  %p2027_p5 = scmp.lt.s32.totalorder %s2021_s18, %s2021_s18 }
   0xa   :  { %p2028_p6 = por %p2027_p5, %p2026_p4 }
   0xc   :  { %p2029_p7 = pnand %p2028_p6, %p2022_p3 }
   0xe   :  { %2032 = shalt.err (!%p2029_p7)
}
   0xf   :  { %s2036_s19 = smov 128   ;;  %s2037_s20 = smov 8  }
  0x10   :  { %21 = dma.hbm_to_vmem [thread:$0]  %s2325_s1, 8192, %s16_s10, [#allocation6], %s2036_s19, %s2036_s19, %s2037_s20  }
  0x11   :  { %2033 = dma.done.wait [#allocation6], 8192  }
  0x12   :  { %2034 = vsyncadd [#allocation6], 4294959104  ;;  %vm65_vm0 = vcmask 1043456   ;;  %vm40_vm1 = vcmask 97280   ;;  %vm2038_vm2 = vmmov 1   ;;  %v33_v0 = vld [vmem:[#allocation5] sm:$0xff] }
  0x13   :  { %vm1806_vm3 = vmpackc.low %vm65_vm0, %vm2038_vm2  ;;  %v34_v1 = vld [vmem:[#allocation5 + $0x8] sm:$0xf]  ;;  %v25_v2 = vld [vmem:[%s2324_s0] sm:$0xff]  ;;  %vm190_vm4 = vcmask 130048   ;;  %vm218_vm5 = vcmask 254080   ;;  %v2040_v53 = vmov 0.0  }
  0x14   :  { %v1805_v3 = vpack.c.bf16 %v34_v1, %v33_v0  ;;  %1533 = vmatprep.mubr.msk.f32.mxu0 %vm40_vm1, %v25_v2  ;;  %v29_v4 = vld [vmem:[%s2324_s0 + $0x20] sm:$0xff]  ;;  %v26_v5 = vld [vmem:[%s2324_s0 + $0x8] sm:$0xff]  ;;  %v27_v7 = vld [vmem:[%s2324_s0 + $0x10] sm:$0xff]  ;;  %vm211_vm6 = vcmask 261248   ;;  %vm216_vm7 = vcmask 122880   ;;  %vm262_vm8 = vcmask 261120  }
  0x15   :  { %v30_v6 = vld [vmem:[%s2324_s0 + $0x28] sm:$0xff]  ;;  %1539 = vmatprep.mubr.msk.f32.mxu1 %vm40_vm1, %v29_v4  ;;  %v31_v8 = vld [vmem:[%s2324_s0 + $0x30] sm:$0xff]  ;;  %v28_v9 = vld [vmem:[%s2324_s0 + $0x18] sm:$0xff]  ;;  %vm2042_vm9 = vmmov 0   ;;  %vm450_vm10 = vcmask 516352   ;;  %s2043_s10 = smov 32  }
  0x16   :  { %1807 = vmatprep.subr.msk.bf16.mxu0 %vm1806_vm3, %v1805_v3  ;;  %1987 = vmatprep.subr.msk.bf16.mxu1 %vm1806_vm3, %v1805_v3  ;;  %v32_v10 = vld [vmem:[%s2324_s0 + $0x38] sm:$0xff]  ;;  %v250_v12 = vld [vmem:[#allocation5 + $0x38] sm:$0xff]  ;;  %v251_v13 = vld [vmem:[#allocation5 + $0x40] sm:$0xff]  ;;  %s2039_s0 = smov 16   ;;  %vm445_vm11 = vcmask 523520   ;;  %vm448_vm12 = vcmask 253952  }
  0x17   :  { %1810 = vmatpush3.bf16.msk.msra.mxu0 %vm1806_vm3, %v1805_v3  ;;  %1988 = vmatpush3.bf16.msk.msra.mxu1 %vm1806_vm3, %v1805_v3  ;;  %v1366_v11 = vld [vmem:[#allocation5 + $0x10] ss:$0 sm:$0xff]  ;;  %v1811_v16 = vpack.c.bf16 %v251_v13, %v250_v12  ;;  %v252_v25 = vld [vmem:[#allocation5 + $0x48] sm:$0xff]  ;;  %v246_v44 = vld [vmem:[#allocation5 + $0x18] sm:$0xff]  ;;  %v2041_v12 = vmov 0.0|0.0   ;;  %vm662_vm13 = vcmask 523264  }
  0x18   :  { %v253_v26 = vld [vmem:[#allocation5 + $0x50] sm:$0xff]  ;;  %v247_v47 = vld [vmem:[#allocation5 + $0x20] sm:$0xff]  ;;  %v248_v61 = vld [vmem:[#allocation5 + $0x28] sm:$0xff]  ;;  %vm825_vm14 = vcmask 1040896   ;;  %s2044_s11 = smov 64   ;;  %vm821_vm15 = vcmask 1048064  }
  0x19   :  { %1812 = vmatprep.subr.bf16.mxu1 %v1811_v16  ;;  %1828 = vmatprep.subr.bf16.mxu0 %v1811_v16  ;;  %v1815_v31 = vpack.c.bf16 %v253_v26, %v252_v25  ;;  %v1819_v50 = vpack.c.bf16 %v247_v47, %v246_v44  ;;  %v249_v62 = vld [vmem:[#allocation5 + $0x30] sm:$0xff]  ;;  %v646_v25 = vld [vmem:[#allocation5 + $0x80] sm:$0xff]  ;;  %v647_v26 = vld [vmem:[#allocation5 + $0x88] sm:$0xff]  ;;  %vm823_vm0 = vcmask 516096   ;;  %vm1178_vm2 = vcmask 1042432  }
  0x1a   :  { %1534 = vmatmul.mubr.msk.f32.vlgmr.msra.gmra.mrb[0].mxu0 %vm40_vm1, %v26_v5  ;;  %1540 = vmatmul.mubr.msk.f32.vlgmr.msra.gmra.mrb[0].mxu1 %vm40_vm1, %v30_v6  ;;  %v1823_v0 = vpack.c.bf16 %v249_v62, %v248_v61  ;;  %v1005_v61 = vld [vmem:[#allocation5 + $0x170] sm:$0xff]  ;;  %v988_v62 = vld [vmem:[#allocation5 + $0xe8] sm:$0xff]  ;;  %vm1193_vm3 = vcmask 0  }
  0x1b   :  { %1536 = vmatprep.mubr.msk.f32.mxu0 %vm40_vm1, %v27_v7  ;;  %1542 = vmatprep.mubr.msk.f32.mxu1 %vm40_vm1, %v31_v8 }
  0x1c   :  { %1814 = vmatpush3.bf16.msra.mxu1 %v1811_v16  ;;  %1830 = vmatpush3.bf16.msra.mxu0 %v1811_v16  ;;  %v653_v16 = vld [vmem:[#allocation5 + $0xb8] sm:$0xff] }
  0x1d   :  { %1816 = vmatprep.subr.bf16.mxu1 %v1815_v31  ;;  %1832 = vmatprep.subr.bf16.mxu0 %v1815_v31 }
  0x1e   :  { %1537 = vmatmul.mubr.msk.f32.gmra.mrb[2].mxu0 %vm40_vm1, %v28_v9  ;;  %1543 = vmatmul.mubr.msk.f32.gmra.mrb[2].mxu1 %vm40_vm1, %v32_v10  ;;  %v650_v9 = vld [vmem:[#allocation5 + $0xa0] sm:$0xff]  ;;  %v651_v10 = vld [vmem:[#allocation5 + $0xa8] sm:$0xff]  ;;  %vm1174_vm1 = vcmask 518144  }
  0x1f   :  { %v2133_v13 = vpack.c.bf16 %v651_v10, %v650_v9  ;;  %v1009_v9 = vld [vmem:[#allocation5 + $0x190] sm:$0xff]  ;;  %v992_v10 = vld [vmem:[#allocation5 + $0x108] sm:$0xff] }
  0x20   :  { %1818 = vmatpush3.bf16.msra.mxu1 %v1815_v31  ;;  %1834 = vmatpush3.bf16.msra.mxu0 %v1815_v31 }
  0x21   :  { %1820 = vmatprep.subr.bf16.mxu1 %v1819_v50  ;;  %1836 = vmatprep.subr.bf16.mxu0 %v1819_v50 }
  0xed   :  { %v1535_v14 = vpop.f32.mrb[0].mxu0  ;;  %v1541_v15 = vpop.f32.mrb[0].mxu1 }
  0xee   :  { %v141_v17 = vadd.f32 %v1535_v14, %v1366_v11  ;;  %v135_v18 = vpop.f32.mrb[1].mxu0  ;;  %v161_v19 = vadd.f32 %v1541_v15, %v1366_v11  ;;  %v155_v20 = vpop.f32.mrb[1].mxu1  ;;  %v643_v14 = vld [vmem:[#allocation5 + $0x68] sm:$0xff]  ;;  %v652_v15 = vld [vmem:[#allocation5 + $0xb0] sm:$0xff] }
  0xef   :  { %v136_v21 = vadd.f32 %v1366_v11, %v135_v18  ;;  %v156_v22 = vadd.f32 %v1366_v11, %v155_v20  ;;  %v644_v18 = vld [vmem:[#allocation5 + $0x70] sm:$0xff]  ;;  %v2139_v20 = vpack.c.bf16 %v653_v16, %v652_v15  ;;  %v1010_v15 = vld [vmem:[#allocation5 + $0x198] sm:$0xff]  ;;  %v1011_v16 = vld [vmem:[#allocation5 + $0x1a0] sm:$0xff] }
  0xf0   :  { %v175_v23 = vmul.f32 0.2, %v141_v17  ;;  %v179_v24 = vmul.f32 0.2, %v161_v19 }
  0xf1   :  { %v174_v27 = vmul.f32 0.2, %v136_v21  ;;  %v1538_v28 = vpop.f32.mrb[2].mxu0  ;;  %v178_v29 = vmul.f32 0.2, %v156_v22  ;;  %v1544_v30 = vpop.f32.mrb[2].mxu1 }
  0xf2   :  { %v183_v32 = vmax.f32 %v141_v17, %v175_v23  ;;  %v151_v33 = vadd.f32 %v1538_v28, %v1366_v11  ;;  %v145_v34 = vpop.f32.mrb[3].mxu0  ;;  %v187_v35 = vmax.f32 %v161_v19, %v179_v24  ;;  %v171_v36 = vadd.f32 %v1544_v30, %v1366_v11  ;;  %v165_v37 = vpop.f32.mrb[3].mxu1  ;;  %v645_v19 = vld [vmem:[#allocation5 + $0x78] sm:$0xff]  ;;  %v655_v23 = vld [vmem:[#allocation5 + $0xc8] sm:$0xff]  ;;  %v656_v28 = vld [vmem:[#allocation5 + $0xd0] sm:$0xff] }
  0xf3   :  { %v146_v38 = vadd.f32 %v1366_v11, %v145_v34  ;;  %v182_v39 = vmax.f32 %v136_v21, %v174_v27  ;;  %v186_v40 = vmax.f32 %v156_v22, %v178_v29  ;;  %v166_v41 = vadd.f32 %v1366_v11, %v165_v37  ;;  %v642_v11 = vld [vmem:[#allocation5 + $0x60] sm:$0xff]  ;;  %v657_v29 = vld [vmem:[#allocation5 + $0xd8] sm:$0xff]  ;;  %v648_v30 = vld [vmem:[#allocation5 + $0x90] sm:$0xff] }
  0xf4   :  { %192 = vst.msk [vmem:[#allocation2 + $0x9] sm:$0xff] %vm190_vm4, %v183_v32  ;;  %v177_v42 = vmul.f32 0.2, %v151_v33  ;;  %221 = vst.msk [vmem:[#allocation2 + $0x2a] sm:$0xff] %vm190_vm4, %v187_v35  ;;  %v181_v43 = vmul.f32 0.2, %v171_v36  ;;  %v2136_v17 = vpack.c.bf16 %v643_v14, %v642_v11  ;;  %v2143_v21 = vpack.c.bf16 %v645_v19, %v644_v18 }
  0xf5   :  { %v176_v45 = vmul.f32 0.2, %v146_v38  ;;  %199 = vrot.lane.b32.xlu0 %v182_v39, %s2039_s0  ;;  %191 = vst.msk [vmem:[#allocation2 + $0x1] sm:$0xff] %vm190_vm4, %v182_v39  ;;  %220 = vst.msk [vmem:[#allocation2 + $0x22] sm:$0xff] %vm190_vm4, %v186_v40  ;;  %v180_v46 = vmul.f32 0.2, %v166_v41  ;;  %v2152_v27 = vpack.c.bf16 %v647_v26, %v646_v25  ;;  %v2157_v31 = vpack.c.bf16 %v657_v29, %v656_v28 }
  0xf6   :  { %v185_v48 = vmax.f32 %v151_v33, %v177_v42  ;;  %v189_v49 = vmax.f32 %v171_v36, %v181_v43  ;;  %v654_v22 = vld [vmem:[#allocation5 + $0xc0] sm:$0xff]  ;;  %v1380_v33 = vld [vmem:[#allocation5 + $0x58] ss:$0 sm:$0xff]  ;;  %v993_v11 = vld [vmem:[#allocation5 + $0x110] sm:$0xff]  ;;  %v2229_v19 = vpack.c.bf16 %v1011_v16, %v1010_v15 }
  0xf7   :  { %v184_v51 = vmax.f32 %v146_v38, %v176_v45  ;;  %v188_v52 = vmax.f32 %v166_v41, %v180_v46  ;;  %v2150_v24 = vpack.c.bf16 %v655_v23, %v654_v22  ;;  %v2225_v14 = vpack.c.bf16 %v993_v11, %v992_v10  ;;  %v995_v18 = vld [vmem:[#allocation5 + $0x120] sm:$0xff]  ;;  %v1013_v22 = vld [vmem:[#allocation5 + $0x1b0] sm:$0xff]  ;;  %v996_v23 = vld [vmem:[#allocation5 + $0x128] sm:$0xff] }
  0xf8   :  { %194 = vst.msk [vmem:[#allocation2 + $0x19] sm:$0xff] %vm190_vm4, %v185_v48  ;;  %223 = vst.msk [vmem:[#allocation2 + $0x3a] sm:$0xff] %vm190_vm4, %v189_v49  ;;  %v1015_v28 = vld [vmem:[#allocation5 + $0x1c0] sm:$0xff]  ;;  %v998_v29 = vld [vmem:[#allocation5 + $0x138] sm:$0xff] }
  0xf9   :  { %219 = vst.msk [vmem:[#allocation2 + $0x20] sm:$0x1] %vm218_vm5, %v2040_v53  ;;  %203 = vrot.lane.b32.xlu1 %v184_v51, %s2039_s0  ;;  %201 = vrot.lane.b32.xlu0 %v183_v32, %s2039_s0  ;;  %245 = vst.msk [vmem:[#allocation2 + $0x41] sm:$0x1] %vm218_vm5, %v2040_v53  ;;  %v649_v32 = vld [vmem:[#allocation5 + $0x98] sm:$0xff] }
  0xfa   :  { %193 = vst.msk [vmem:[#allocation2 + $0x11] sm:$0xff] %vm190_vm4, %v184_v51  ;;  %222 = vst.msk [vmem:[#allocation2 + $0x32] sm:$0xff] %vm190_vm4, %v188_v52  ;;  %v2162_v34 = vpack.c.bf16 %v649_v32, %v648_v30  ;;  %v999_v30 = vld [vmem:[#allocation5 + $0x140] sm:$0xff] }
  0xfb   :  { %v2249_v32 = vpack.c.bf16 %v999_v30, %v998_v29 }
  0xfd   :  { %205 = vrot.lane.b32.xlu1 %v185_v48, %s2039_s0  ;;  %228 = vrot.lane.b32.xlu0 %v186_v40, %s2039_s0 }
 0x101   :  { %230 = vrot.lane.b32.xlu1 %v187_v35, %s2039_s0  ;;  %232 = vrot.lane.b32.xlu0 %v188_v52, %s2039_s0 }
 0x105   :  { %234 = vrot.lane.b32.xlu1 %v189_v49, %s2039_s0 }
 0x167   :  { %v200_v54 = vpop.permute.xlu0 %199 }
 0x168   :  { %212 = vst.msk [vmem:[#allocation2] sm:$0xff] %vm211_vm6, %v200_v54 }
 0x169   :  { %217 = vst.msk [vmem:[#allocation2] sm:$0x1] %vm216_vm7, %v2040_v53 }
 0x16b   :  { %v204_v55 = vpop.permute.xlu1 %203  ;;  %v202_v56 = vpop.permute.xlu0 %201 }
 0x16c   :  { %214 = vst.msk [vmem:[#allocation2 + $0x10] sm:$0xff] %vm211_vm6, %v204_v55  ;;  %213 = vst.msk [vmem:[#allocation2 + $0x8] sm:$0xff] %vm211_vm6, %v202_v56 }
 0x16f   :  { %v206_v57 = vpop.permute.xlu1 %205  ;;  %v229_v58 = vpop.permute.xlu0 %228 }
 0x170   :  { %215 = vst.msk [vmem:[#allocation2 + $0x18] sm:$0xff] %vm211_vm6, %v206_v57  ;;  %240 = vst.msk [vmem:[#allocation2 + $0x21] sm:$0xff] %vm211_vm6, %v229_v58 }
 0x171   :  { %244 = vst.msk [vmem:[#allocation2 + $0x21] sm:$0x1] %vm216_vm7, %v2040_v53 }
 0x173   :  { %v259_v59 = vld [vmem:[#allocation2 + $0x2] ss:$2 sm:$0xff]  ;;  %v231_v60 = vpop.permute.xlu1 %230  ;;  %v233_v63 = vpop.permute.xlu0 %232 }
 0x174   :  { %1553 = vmatprep.mubr.msk.f32.mxu1 %vm262_vm8, %v259_v59  ;;  %241 = vst.msk [vmem:[#allocation2 + $0x29] sm:$0xff] %vm211_vm6, %v231_v60  ;;  %242 = vst.msk [vmem:[#allocation2 + $0x31] sm:$0xff] %vm211_vm6, %v233_v63  ;;  %v255_v3 = vld [vmem:[#allocation2] ss:$2 sm:$0xff]  ;;  %v1004_v60 = vld [vmem:[#allocation5 + $0x168] sm:$0xff] }
 0x175   :  { %v2208_v63 = vpack.c.bf16 %v1005_v61, %v1004_v60 }
 0x177   :  { %v261_v1 = vld [vmem:[#allocation2 + $0x12] ss:$2 sm:$0xff]  ;;  %v235_v2 = vpop.permute.xlu1 %234 }
 0x178   :  { %1554 = vmatmul.mubr.msk.f32.vlgmr.msra.gmra.mrb[4].mxu1 %vm262_vm8, %v261_v1  ;;  %243 = vst.msk [vmem:[#allocation2 + $0x39] sm:$0xff] %vm211_vm6, %v235_v2  ;;  %v257_v6 = vld [vmem:[#allocation2 + $0x10] ss:$2 sm:$0xff]  ;;  %v1006_v1 = vld [vmem:[#allocation5 + $0x178] sm:$0xff]  ;;  %v1007_v2 = vld [vmem:[#allocation5 + $0x180] sm:$0xff] }
 0x179   :  { %1822 = vmatpush3.bf16.msra.mxu1 %v1819_v50  ;;  %1564 = vmatprep.mubr.msk.f32.mxu1 %vm262_vm8, %v255_v3 }
 0x17a   :  { %1824 = vmatprep.subr.bf16.mxu1 %v1823_v0 }
 0x17b   :  { %v457_v4 = vld [vmem:[#allocation2 + $0x23] ss:$2 sm:$0xff] }
 0x17c   :  { %1575 = vmatprep.mubr.msk.f32.mxu0 %vm262_vm8, %v457_v4  ;;  %v453_v5 = vld [vmem:[#allocation2 + $0x21] ss:$2 sm:$0xff] }
 0x17d   :  { %1826 = vmatpush3.bf16.msra.mxu1 %v1823_v0  ;;  %v990_v4 = vld [vmem:[#allocation5 + $0xf8] sm:$0xff] }
 0x17e   :  { %1843 = vmatprep.subr.bf16.mxu1 %v2041_v12 }
 0x17f   :  { %v459_v7 = vld [vmem:[#allocation2 + $0x33] ss:$2 sm:$0xff] }
 0x180   :  { %1565 = vmatmul.mubr.msk.f32.vlgmr.msra.gmra.mrb[4].mxu1 %vm262_vm8, %v257_v6  ;;  %1576 = vmatmul.mubr.msk.f32.vlgmr.msra.gmra.mrb[4].mxu0 %vm262_vm8, %v459_v7  ;;  %v455_v8 = vld [vmem:[#allocation2 + $0x31] ss:$2 sm:$0xff]  ;;  %v2213_v6 = vpack.c.bf16 %v1007_v2, %v1006_v1 }
 0x181   :  { %1838 = vmatpush3.bf16.msra.mxu0 %v1819_v50  ;;  %1586 = vmatprep.mubr.msk.f32.mxu0 %vm262_vm8, %v453_v5  ;;  %v991_v5 = vld [vmem:[#allocation5 + $0x100] sm:$0xff] }
 0x182   :  { %1840 = vmatprep.subr.bf16.mxu0 %v1823_v0  ;;  %1845 = vmatpush3.bf16.msra.mxu1 %v2133_v13  ;;  %v2217_v7 = vpack.c.bf16 %v991_v5, %v990_v4 }
 0x183   :  { %1846 = vmatprep.subr.bf16.mxu1 %v2041_v12  ;;  %1605 = vmatprep.mubr.msk.f32.mxu1 %vm2042_vm9, %v2040_v53 }
 0x185   :  { %1842 = vmatpush3.bf16.msra.mxu0 %v1823_v0  ;;  %v989_v0 = vld [vmem:[#allocation5 + $0xf0] sm:$0xff] }
 0x186   :  { %1855 = vmatprep.subr.bf16.mxu0 %v2041_v12  ;;  %1848 = vmatpush3.bf16.msra.mxu1 %v2139_v20  ;;  %v2210_v3 = vpack.c.bf16 %v989_v0, %v988_v62 }
 0x187   :  { %1849 = vmatprep.subr.bf16.mxu1 %v2041_v12 }
 0x188   :  { %1587 = vmatmul.mubr.msk.f32.vlgmr.msra.gmra.mrb[4].mxu0 %vm262_vm8, %v455_v8  ;;  %v1008_v8 = vld [vmem:[#allocation5 + $0x188] sm:$0xff] }
 0x189   :  { %1857 = vmatpush3.bf16.msra.mxu0 %v2136_v17  ;;  %1624 = vmatprep.mubr.msk.f32.mxu0 %vm2042_vm9, %v2040_v53 }
 0x18a   :  { %1858 = vmatprep.subr.bf16.mxu0 %v2041_v12  ;;  %1851 = vmatpush3.bf16.msra.mxu1 %v2150_v24 }
 0x18b   :  { %1852 = vmatprep.subr.bf16.mxu1 %v2041_v12 }
 0x18d   :  { %1860 = vmatpush3.bf16.msra.mxu0 %v2143_v21 }
 0x18e   :  { %1861 = vmatprep.subr.bf16.mxu0 %v2041_v12  ;;  %1854 = vmatpush3.bf16.msra.mxu1 %v2157_v31 }
 0x18f   :  { %1867 = vmatprep.subr.bf16.mxu1 %v2041_v12 }
 0x191   :  { %1863 = vmatpush3.bf16.msra.mxu0 %v2152_v27 }
 0x192   :  { %1864 = vmatprep.subr.bf16.mxu0 %v2041_v12 }
 0x195   :  { %1866 = vmatpush3.bf16.msra.mxu0 %v2162_v34 }
 0x196   :  { %1879 = vmatprep.subr.bf16.mxu0 %v2041_v12 }
 0x253   :  { %v1566_v35 = vpop.f32.mrb[4].mxu1 }
 0x254   :  { %v430_v36 = vadd.f32 %v1566_v35, %v1380_v33  ;;  %v416_v37 = vpop.f32.mrb[5].mxu1 }
 0x255   :  { %v429_v38 = vadd.f32 %v1380_v33, %v416_v37  ;;  %v1001_v37 = vld [vmem:[#allocation5 + $0x150] sm:$0xff] }
 0x256   :  { %v432_v39 = vmul.f32 0.2, %v430_v36 }
 0x257   :  { %v431_v40 = vmul.f32 0.2, %v429_v38 }
 0x258   :  { %v434_v41 = vmax.f32 %v430_v36, %v432_v39  ;;  %v1000_v36 = vld [vmem:[#allocation5 + $0x148] sm:$0xff]  ;;  %v1018_v39 = vld [vmem:[#allocation5 + $0x1d8] sm:$0xff] }
 0x259   :  { %v433_v42 = vmax.f32 %v429_v38, %v431_v40  ;;  %v2258_v38 = vpack.c.bf16 %v1001_v37, %v1000_v36  ;;  %v1019_v40 = vld [vmem:[#allocation5 + $0x1e0] sm:$0xff] }
 0x25a   :  { %436 = vst.msk [vmem:[#allocation3 + $0x9] sm:$0xff] %vm262_vm8, %v434_v41  ;;  %441 = vrot.lane.b32.xlu1 %v434_v41, %s2043_s10  ;;  %v1002_v41 = vld [vmem:[#allocation5 + $0x158] sm:$0xff] }
 0x25b   :  { %451 = vst.msk [vmem:[#allocation3 + $0x10] sm:$0x1] %vm450_vm10, %v2040_v53  ;;  %439 = vrot.lane.b32.xlu0 %v433_v42, %s2043_s10  ;;  %v1588_v43 = vpop.f32.mrb[4].mxu0 }
 0x25c   :  { %435 = vst.msk [vmem:[#allocation3 + $0x1] sm:$0xff] %vm262_vm8, %v433_v42  ;;  %v623_v44 = vadd.f32 %v1588_v43, %v1380_v33  ;;  %v613_v45 = vpop.f32.mrb[5].mxu0  ;;  %v2263_v42 = vpack.c.bf16 %v1019_v40, %v1018_v39  ;;  %v1003_v43 = vld [vmem:[#allocation5 + $0x160] sm:$0xff] }
 0x25d   :  { %v622_v46 = vadd.f32 %v1380_v33, %v613_v45  ;;  %v1016_v33 = vld [vmem:[#allocation5 + $0x1c8] sm:$0xff]  ;;  %v2266_v45 = vpack.c.bf16 %v1003_v43, %v1002_v41 }
 0x25e   :  { %v625_v47 = vmul.f32 0.2, %v623_v44 }
 0x25f   :  { %v624_v48 = vmul.f32 0.2, %v622_v46 }
 0x260   :  { %v627_v49 = vmax.f32 %v623_v44, %v625_v47  ;;  %v1387_v47 = vld [vmem:[#allocation5 + $0xe0] ss:$0 sm:$0xff] }
 0x261   :  { %v626_v50 = vmax.f32 %v622_v46, %v624_v48 }
 0x262   :  { %629 = vst.msk [vmem:[#allocation3 + $0x1a] sm:$0xff] %vm262_vm8, %v627_v49  ;;  %634 = vrot.lane.b32.xlu1 %v627_v49, %s2043_s10 }
 0x263   :  { %641 = vst.msk [vmem:[#allocation3 + $0x21] sm:$0x1] %vm450_vm10, %v2040_v53  ;;  %632 = vrot.lane.b32.xlu0 %v626_v50, %s2043_s10 }
 0x264   :  { %628 = vst.msk [vmem:[#allocation3 + $0x12] sm:$0xff] %vm262_vm8, %v626_v50 }
 0x2cc   :  { %v442_v51 = vpop.permute.xlu1 %441 }
 0x2cd   :  { %447 = vst.msk [vmem:[#allocation3 + $0x8] sm:$0xff] %vm445_vm11, %v442_v51  ;;  %v440_v52 = vpop.permute.xlu0 %439 }
 0x2ce   :  { %446 = vst.msk [vmem:[#allocation3] sm:$0xff] %vm445_vm11, %v440_v52 }
 0x2cf   :  { %449 = vst.msk [vmem:[#allocation3] sm:$0x1] %vm448_vm12, %v2040_v53 }
 0x2d4   :  { %v635_v54 = vpop.permute.xlu1 %634 }
 0x2d5   :  { %v661_v55 = vld [vmem:[#allocation3 + $0x2] ss:$2 sm:$0xff]  ;;  %639 = vst.msk [vmem:[#allocation3 + $0x19] sm:$0xff] %vm445_vm11, %v635_v54  ;;  %v633_v56 = vpop.permute.xlu0 %632 }
 0x2d6   :  { %1606 = vmatmul.mubr.msk.f32.vlgmr.msra.gmra.mrb[6].mxu1 %vm662_vm13, %v661_v55  ;;  %v659_v57 = vld [vmem:[#allocation3] ss:$2 sm:$0xff]  ;;  %638 = vst.msk [vmem:[#allocation3 + $0x11] sm:$0xff] %vm445_vm11, %v633_v56 }
 0x2d7   :  { %1869 = vmatpush3.bf16.msra.mxu1 %v2133_v13  ;;  %1625 = vmatmul.mubr.msk.f32.vlgmr.msra.gmra.mrb[6].mxu0 %vm662_vm13, %v659_v57  ;;  %640 = vst.msk [vmem:[#allocation3 + $0x11] sm:$0x1] %vm448_vm12, %v2040_v53  ;;  %v2221_v13 = vpack.c.bf16 %v1009_v9, %v1008_v8 }
 0x2d8   :  { %1881 = vmatpush3.bf16.msra.mxu0 %v2136_v17  ;;  %1870 = vmatprep.subr.bf16.mxu1 %v2041_v12  ;;  %v994_v17 = vld [vmem:[#allocation5 + $0x118] sm:$0xff] }
 0x2d9   :  { %1882 = vmatprep.subr.bf16.mxu0 %v2041_v12  ;;  %1643 = vmatprep.mubr.msk.f32.mxu1 %vm2042_vm9, %v2040_v53 }
 0x2da   :  { %1662 = vmatprep.mubr.msk.f32.mxu0 %vm2042_vm9, %v2040_v53 }
 0x2db   :  { %1872 = vmatpush3.bf16.msra.mxu1 %v2139_v20  ;;  %v2233_v20 = vpack.c.bf16 %v995_v18, %v994_v17 }
 0x2dc   :  { %1884 = vmatpush3.bf16.msra.mxu0 %v2143_v21  ;;  %1873 = vmatprep.subr.bf16.mxu1 %v2041_v12  ;;  %v1012_v21 = vld [vmem:[#allocation5 + $0x1a8] sm:$0xff] }
 0x2dd   :  { %1885 = vmatprep.subr.bf16.mxu0 %v2041_v12  ;;  %v830_v58 = vld [vmem:[#allocation3 + $0x13] ss:$2 sm:$0xff]  ;;  %v2237_v25 = vpack.c.bf16 %v1013_v22, %v1012_v21 }
 0x2de   :  { %v828_v59 = vld [vmem:[#allocation3 + $0x11] ss:$2 sm:$0xff] }
 0x2df   :  { %1875 = vmatpush3.bf16.msra.mxu1 %v2150_v24  ;;  %v997_v24 = vld [vmem:[#allocation5 + $0x130] sm:$0xff] }
 0x2e0   :  { %1887 = vmatpush3.bf16.msra.mxu0 %v2152_v27  ;;  %1876 = vmatprep.subr.bf16.mxu1 %v2041_v12  ;;  %v2241_v26 = vpack.c.bf16 %v997_v24, %v996_v23  ;;  %v1014_v27 = vld [vmem:[#allocation5 + $0x1b8] sm:$0xff] }
 0x2e1   :  { %1888 = vmatprep.subr.bf16.mxu0 %v2041_v12 }
 0x2e3   :  { %1878 = vmatpush3.bf16.msra.mxu1 %v2157_v31  ;;  %v2245_v31 = vpack.c.bf16 %v1015_v28, %v1014_v27 }
 0x2e4   :  { %1890 = vmatpush3.bf16.msra.mxu0 %v2162_v34  ;;  %1891 = vmatprep.subr.bf16.mxu1 %v2041_v12  ;;  %v1017_v34 = vld [vmem:[#allocation5 + $0x1d0] sm:$0xff] }
 0x2e5   :  { %1915 = vmatprep.subr.bf16.mxu0 %v2041_v12  ;;  %v2256_v35 = vpack.c.bf16 %v1017_v34, %v1016_v33  ;;  %v1022_v33 = vld [vmem:[#allocation5 + $0x1f8] sm:$0x1] }
 0x2e6   :  { %1644 = vmatmul.mubr.msk.f32.vlgmr.msra.gmra.mrb[8].mxu1 %vm662_vm13, %v830_v58 }
 0x2e7   :  { %1663 = vmatmul.mubr.msk.f32.vlgmr.msra.gmra.mrb[8].mxu0 %vm662_vm13, %v828_v59  ;;  %1697 = vmatprep.mubr.msk.f32.mxu1 %vm2042_vm9, %v2040_v53 }
 0x2e8   :  { %1732 = vmatprep.mubr.msk.f32.mxu0 %vm2042_vm9, %v2040_v53  ;;  %1893 = vmatpush3.bf16.msra.mxu1 %v2208_v63 }
 0x2e9   :  { %1917 = vmatpush3.bf16.msra.mxu0 %v2210_v3  ;;  %1894 = vmatprep.subr.bf16.mxu1 %v2041_v12 }
 0x2ea   :  { %1918 = vmatprep.subr.bf16.mxu0 %v2041_v12 }
 0x2ec   :  { %1896 = vmatpush3.bf16.msra.mxu1 %v2213_v6 }
 0x2ed   :  { %1920 = vmatpush3.bf16.msra.mxu0 %v2217_v7  ;;  %1897 = vmatprep.subr.bf16.mxu1 %v2041_v12 }
 0x2ee   :  { %1921 = vmatprep.subr.bf16.mxu0 %v2041_v12 }
 0x2f0   :  { %1899 = vmatpush3.bf16.msra.mxu1 %v2221_v13 }
 0x2f1   :  { %1923 = vmatpush3.bf16.msra.mxu0 %v2225_v14  ;;  %1900 = vmatprep.subr.bf16.mxu1 %v2041_v12 }
 0x2f2   :  { %1924 = vmatprep.subr.bf16.mxu0 %v2041_v12 }
 0x2f4   :  { %1902 = vmatpush3.bf16.msra.mxu1 %v2229_v19 }
 0x2f5   :  { %1926 = vmatpush3.bf16.msra.mxu0 %v2233_v20  ;;  %1903 = vmatprep.subr.bf16.mxu1 %v2041_v12 }
 0x2f6   :  { %1927 = vmatprep.subr.bf16.mxu0 %v2041_v12 }
 0x2f8   :  { %1905 = vmatpush3.bf16.msra.mxu1 %v2237_v25 }
 0x2f9   :  { %1929 = vmatpush3.bf16.msra.mxu0 %v2241_v26  ;;  %1906 = vmatprep.subr.bf16.mxu1 %v2041_v12 }
 0x2fa   :  { %1930 = vmatprep.subr.bf16.mxu0 %v2041_v12 }
 0x2fc   :  { %1908 = vmatpush3.bf16.msra.mxu1 %v2245_v31 }
 0x2fd   :  { %1932 = vmatpush3.bf16.msra.mxu0 %v2249_v32  ;;  %1909 = vmatprep.subr.bf16.mxu1 %v2041_v12 }
 0x2fe   :  { %1933 = vmatprep.subr.bf16.mxu0 %v2041_v12 }
 0x300   :  { %1911 = vmatpush3.bf16.msra.mxu1 %v2256_v35 }
 0x301   :  { %1935 = vmatpush3.bf16.msra.mxu0 %v2258_v38  ;;  %1912 = vmatprep.subr.bf16.mxu1 %v2041_v12 }
 0x302   :  { %1936 = vmatprep.subr.bf16.mxu0 %v2041_v12 }
 0x304   :  { %1914 = vmatpush3.bf16.msra.mxu1 %v2263_v42 }
 0x305   :  { %1938 = vmatpush3.bf16.msra.mxu0 %v2266_v45  ;;  %1939 = vmatprep.subr.bf16.mxu1 %v2041_v12 }
 0x306   :  { %1963 = vmatprep.subr.bf16.mxu0 %v2041_v12 }
 0x3a9   :  { %v732_v44 = vpop.f32.mrb[6].mxu1 }
 0x3aa   :  { %v1607_v46 = vpop.f32.mrb[7].mxu1  ;;  %v805_v48 = vpop.f32.mrb[6].mxu0 }
 0x3ab   :  { %v806_v49 = vadd.f32 %v805_v48, %v732_v44  ;;  %v1626_v50 = vpop.f32.mrb[7].mxu0 }
 0x3ad   :  { %v813_v51 = vadd.f32 %v1387_v47, %v806_v49 }
 0x3af   :  { %v814_v52 = vmul.f32 0.2, %v813_v51 }
 0x3b1   :  { %v815_v54 = vmax.f32 %v813_v51, %v814_v52 }
 0x3b3   :  { %818 = vrot.lane.b32.xlu0 %v815_v54, %s2044_s11  ;;  %816 = vst.msk [vmem:[#allocation4 + $0x1] sm:$0xff] %vm662_vm13, %v815_v54 }
 0x3b4   :  { %826 = vst.msk [vmem:[#allocation4 + $0x8] sm:$0x1] %vm825_vm14, %v2040_v53 }
 0x3b9   :  { %v900_v55 = vpop.f32.mrb[8].mxu1 }
 0x3ba   :  { %v1645_v56 = vpop.f32.mrb[9].mxu1  ;;  %v973_v57 = vpop.f32.mrb[8].mxu0 }
 0x3bb   :  { %v974_v58 = vadd.f32 %v973_v57, %v900_v55  ;;  %v1664_v59 = vpop.f32.mrb[9].mxu0 }
 0x3bd   :  { %v977_v60 = vadd.f32 %v1387_v47, %v974_v58 }
 0x3bf   :  { %v978_v61 = vmul.f32 0.2, %v977_v60 }
 0x3c1   :  { %v979_v62 = vmax.f32 %v977_v60, %v978_v61 }
 0x3c3   :  { %982 = vrot.lane.b32.xlu1 %v979_v62, %s2044_s11  ;;  %980 = vst.msk [vmem:[#allocation4 + $0xa] sm:$0xff] %vm662_vm13, %v979_v62 }
 0x3c4   :  { %987 = vst.msk [vmem:[#allocation4 + $0x11] sm:$0x1] %vm825_vm14, %v2040_v53 }
 0x425   :  { %v819_v0 = vpop.permute.xlu0 %818 }
 0x426   :  { %822 = vst.msk [vmem:[#allocation4] sm:$0xff] %vm821_vm15, %v819_v0 }
 0x427   :  { %824 = vst.msk [vmem:[#allocation4] sm:$0x1] %vm823_vm0, %v2040_v53 }
 0x42d   :  { %v1025_v1 = vld [vmem:[#allocation4 + $0x2] ss:$2 sm:$0xf] }
 0x42e   :  { %1698 = vmatmul.mubr.f32.vlgmr.msra.gmra.mrb[10].mxu1 %v1025_v1  ;;  %v1023_v2 = vld [vmem:[#allocation4] ss:$2 sm:$0xf] }
 0x42f   :  { %1941 = vmatpush3.bf16.msra.mxu1 %v2208_v63  ;;  %1733 = vmatmul.mubr.f32.vlgmr.msra.gmra.mrb[10].mxu0 %v1023_v2 }
 0x430   :  { %1965 = vmatpush3.bf16.msra.mxu0 %v2210_v3  ;;  %1942 = vmatprep.subr.bf16.mxu1 %v2041_v12 }
 0x431   :  { %1966 = vmatprep.subr.bf16.mxu0 %v2041_v12  ;;  %1767 = vmatprep.mubr.msk.f32.mxu1 %vm2042_vm9, %v2040_v53 }
 0x432   :  { %1802 = vmatprep.mubr.msk.f32.mxu0 %vm2042_vm9, %v2040_v53 }
 0x433   :  { %1944 = vmatpush3.bf16.msra.mxu1 %v2213_v6  ;;  %v1390_v6 = vld [vmem:[#allocation5 + $0x1e8] ss:$0 sm:$0xff] }
 0x434   :  { %1968 = vmatpush3.bf16.msra.mxu0 %v2217_v7  ;;  %1945 = vmatprep.subr.bf16.mxu1 %v2041_v12 }
 0x435   :  { %v983_v63 = vpop.permute.xlu1 %982  ;;  %1969 = vmatprep.subr.bf16.mxu0 %v2041_v12 }
 0x436   :  { %985 = vst.msk [vmem:[#allocation4 + $0x9] sm:$0xff] %vm821_vm15, %v983_v63 }
 0x437   :  { %986 = vst.msk [vmem:[#allocation4 + $0x9] sm:$0x1] %vm823_vm0, %v2040_v53  ;;  %1947 = vmatpush3.bf16.msra.mxu1 %v2221_v13  ;;  %v1021_v13 = vld [vmem:[#allocation5 + $0x1f0] sm:$0x7] }
 0x438   :  { %1971 = vmatpush3.bf16.msra.mxu0 %v2225_v14  ;;  %1948 = vmatprep.subr.bf16.mxu1 %v2041_v12 }
 0x439   :  { %1972 = vmatprep.subr.bf16.mxu0 %v2041_v12 }
 0x43b   :  { %1950 = vmatpush3.bf16.msra.mxu1 %v2229_v19 }
 0x43c   :  { %1974 = vmatpush3.bf16.msra.mxu0 %v2233_v20  ;;  %1951 = vmatprep.subr.bf16.mxu1 %v2041_v12 }
 0x43d   :  { %1975 = vmatprep.subr.bf16.mxu0 %v2041_v12  ;;  %v1198_v53 = vld [vmem:[#allocation4 + $0xb] ss:$2 sm:$0xf] }
 0x43e   :  { %v1196_v3 = vld [vmem:[#allocation4 + $0x9] ss:$2 sm:$0xf] }
 0x43f   :  { %1953 = vmatpush3.bf16.msra.mxu1 %v2237_v25 }
 0x440   :  { %1977 = vmatpush3.bf16.msra.mxu0 %v2241_v26  ;;  %1954 = vmatprep.subr.bf16.mxu1 %v2041_v12 }
 0x441   :  { %1978 = vmatprep.subr.bf16.mxu0 %v2041_v12 }
 0x443   :  { %1956 = vmatpush3.bf16.msra.mxu1 %v2245_v31 }
 0x444   :  { %1980 = vmatpush3.bf16.msra.mxu0 %v2249_v32  ;;  %1957 = vmatprep.subr.bf16.mxu1 %v2041_v12 }
 0x445   :  { %1981 = vmatprep.subr.bf16.mxu0 %v2041_v12 }
 0x447   :  { %1959 = vmatpush3.bf16.msra.mxu1 %v2256_v35 }
 0x448   :  { %1983 = vmatpush3.bf16.msra.mxu0 %v2258_v38  ;;  %1960 = vmatprep.subr.bf16.mxu1 %v2041_v12 }
 0x449   :  { %1984 = vmatprep.subr.bf16.mxu0 %v2041_v12 }
 0x44b   :  { %1962 = vmatpush3.bf16.msra.mxu1 %v2263_v42 }
 0x44c   :  { %1986 = vmatpush3.bf16.msra.mxu0 %v2266_v45 }
 0x44e   :  { %1768 = vmatmul.mubr.f32.vlgmr.msra.gmra.mrb[12].mxu1 %v1198_v53 }
 0x44f   :  { %1803 = vmatmul.mubr.f32.vlgmr.msra.gmra.mrb[12].mxu0 %v1196_v3 }
 0x501   :  { %v1092_v4 = vpop.f32.mrb[10].mxu1 }
 0x502   :  { %v1699_v5 = vpop.f32.mrb[11].mxu1  ;;  %v1162_v7 = vpop.f32.mrb[10].mxu0 }
 0x503   :  { %v1163_v8 = vadd.f32 %v1162_v7, %v1092_v4  ;;  %v1734_v9 = vpop.f32.mrb[11].mxu0 }
 0x505   :  { %v1170_v10 = vadd.f32 %v1390_v6, %v1163_v8 }
 0x507   :  { %v1171_v11 = vmul.f32 0.2, %v1170_v10 }
 0x509   :  { %v1172_v14 = vmax.f32 %v1170_v10, %v1171_v11 }
 0x50b   :  { %v1173_v12 = vmul.f32 %v1172_v14, %v1021_v13 }
 0x50d   :  { %v1175_v15 = vsel %vm1174_vm1, %v1173_v12, 0.0 }
 0x50e   :  { %1176 = vadd.xlane.f32.xlu0 %v1175_v15 }
 0x521   :  { %v1265_v16 = vpop.f32.mrb[12].mxu1 }
 0x522   :  { %v1769_v17 = vpop.f32.mrb[13].mxu1  ;;  %v1335_v18 = vpop.f32.mrb[12].mxu0 }
 0x523   :  { %v1336_v19 = vadd.f32 %v1335_v18, %v1265_v16  ;;  %v1804_v20 = vpop.f32.mrb[13].mxu0 }
 0x525   :  { %v1339_v21 = vadd.f32 %v1390_v6, %v1336_v19 }
 0x527   :  { %v1340_v22 = vmul.f32 0.2, %v1339_v21 }
 0x529   :  { %v1341_v23 = vmax.f32 %v1339_v21, %v1340_v22 }
 0x52b   :  { %v1342_v24 = vmul.f32 %v1341_v23, %v1021_v13 }
 0x52d   :  { %v1343_v25 = vsel %vm1174_vm1, %v1342_v24, 0.0 }
 0x52e   :  { %1344 = vadd.xlane.f32.xlu1 %v1343_v25 }
 0x59b   :  { %v1177_v26 = vpop.xlane.xlu0 %1176 }
 0x59c   :  { %v1179_v27 = vsel %vm1178_vm2, %v1177_v26, 0.0 }
 0x59d   :  { %v1180_v28 = vrot.slane %v1179_v27, 4 }
 0x59f   :  { %v1181_v29 = vadd.f32 %v1180_v28, %v1179_v27 }
 0x5a1   :  { %v1182_v30 = vrot.slane %v1181_v29, 2 }
 0x5a3   :  { %v1183_v31 = vadd.f32 %v1182_v30, %v1181_v29 }
 0x5a5   :  { %v1184_v32 = vrot.slane %v1183_v31, 1 }
 0x5a7   :  { %v1185_v34 = vadd.f32 %v1184_v32, %v1183_v31 }
 0x5a9   :  { %v1186_v35 = vadd.f32 %v1185_v34, %v1022_v33 }
 0x5ab   :  { %v1187_v36 = vsub.f32 0.0, %v1186_v35 }
 0x5ad   :  { %v1188_v37 = vmul.f32 1.442695, %v1187_v36 }
 0x5af   :  { %2003 = vpow2.f32 %v1188_v37 }
 0x5b9   :  { %v2004_v38 = vpop.eup %2003 }
 0x5ba   :  { %v1190_v39 = vadd.f32 1.0, %v2004_v38 }
 0x5bb   :  { %v1345_v40 = vpop.xlane.xlu1 %1344 }
 0x5bc   :  { %2005 = vrcp.f32 %v1190_v39  ;;  %v1346_v41 = vsel %vm1178_vm2, %v1345_v40, 0.0 }
 0x5bd   :  { %v1347_v42 = vrot.slane %v1346_v41, 4 }
 0x5bf   :  { %v1348_v43 = vadd.f32 %v1347_v42, %v1346_v41 }
 0x5c1   :  { %v1349_v44 = vrot.slane %v1348_v43, 2 }
 0x5c3   :  { %v1350_v45 = vadd.f32 %v1349_v44, %v1348_v43 }
 0x5c5   :  { %v1351_v46 = vrot.slane %v1350_v45, 1 }
 0x5c6   :  { %v2006_v47 = vpop.eup %2005 }
 0x5c7   :  { %1194 = vst.msk [vmem:[%s2326_s2] sm:$0x1] %vm1193_vm3, %v2006_v47  ;;  %v1352_v48 = vadd.f32 %v1351_v46, %v1350_v45 }
 0x5c9   :  { %v1353_v49 = vadd.f32 %v1352_v48, %v1022_v33 }
 0x5cb   :  { %v1354_v50 = vsub.f32 0.0, %v1353_v49 }
 0x5cd   :  { %v1355_v51 = vmul.f32 1.442695, %v1354_v50 }
 0x5cf   :  { %2007 = vpow2.f32 %v1355_v51 }
 0x5d9   :  { %v2008_v52 = vpop.eup %2007 }
 0x5da   :  { %v1357_v54 = vadd.f32 1.0, %v2008_v52 }
 0x5dc   :  { %2009 = vrcp.f32 %v1357_v54 }
 0x5e6   :  { %v2010_v55 = vpop.eup %2009 }
 0x5e7   :  { %1360 = vst.msk [vmem:[%s2326_s2 + $0x1] sm:$0x1] %vm1193_vm3, %v2010_v55 }
 0x5e8   :  { %1365 = vsyncpa [#allocation6], 1 }

</bundles_post_ra>
